<compile_context>
chip_gen: v7x
topology: tpu7x:2x2x1
jax: 0.10.0
libtpu: 0.0.40
codegen_flags: <defaults>
</compile_context>

<pallas_src>
import functools

import jax
import jax.numpy as jnp
from jax import lax
from jax.experimental import pallas as pl
from jax.experimental.pallas import tpu as pltpu


# ---------------------------------------------------------------------------
# Kernels
# ---------------------------------------------------------------------------
def _prw_kernel(seqs_i_ref, seqs_j_ref, w1_ref, b1_ref, w2_ref, b2_ref,
                relt_ref, prw_ref, *, ti, tj, c_z):
    """One (b, i, j) tile of the pair representation.

    prw[b, i0+p, j0+q, c] = l1(seqs)[b, j0+q, c] + l2(seqs)[b, i0+p, c]
                            + T[clip((j0+q) - (i0+p), -32, 32) + 32, c]
    """
    i0 = pl.program_id(1) * ti
    j0 = pl.program_id(2) * tj

    # l2 projection of rows i  -> (ti, c_z); l1 projection of rows j -> (tj, c_z)
    lj_t = (jnp.dot(seqs_i_ref[0], w2_ref[...],
                    preferred_element_type=jnp.float32) + b2_ref[...])
    li_t = (jnp.dot(seqs_j_ref[0], w1_ref[...],
                    preferred_element_type=jnp.float32) + b1_ref[...])

    # Relative-positional encoding computed in-kernel (no HBM relpos stream).
    pi = lax.broadcasted_iota(jnp.int32, (ti, tj), 0) + i0       # absolute i
    qj = lax.broadcasted_iota(jnp.int32, (ti, tj), 1) + j0       # absolute j
    d = jnp.clip(qj - pi, -32, 32) + 32                          # (ti, tj) in [0,64]
    kk = lax.broadcasted_iota(jnp.int32, (ti, tj, 65), 2)
    oh = (d[:, :, None] == kk).astype(jnp.float32)               # (ti, tj, 65)
    rel = jnp.dot(oh.reshape(ti * tj, 65), relt_ref[...],
                  preferred_element_type=jnp.float32)            # (ti*tj, c_z)
    rel = rel.reshape(ti, tj, c_z)

    prw = lj_t[:, None, :] + li_t[None, :, :] + rel              # (ti, tj, c_z)
    prw_ref[0] = prw.astype(prw_ref.dtype)


def _msa_kernel(evos_ref, wp_ref, bp_ref, msa_ref):
    """All s PSSM layers fused into one lane-dense matmul: (TL,21)@(21,s*c_m)."""
    msa_ref[0] = (jnp.dot(evos_ref[0], wp_ref[...],
                          preferred_element_type=jnp.float32)
                  + bp_ref[...]).astype(msa_ref.dtype)


# ---------------------------------------------------------------------------
# Tile choosers (size for VMEM incl. the in-kernel one-hot temporary)
# ---------------------------------------------------------------------------
def _pick_pair_tile(L, c_z, budget_bytes=16 << 20):
    # Rough per-step working set (f32):
    #   t*t*4 * (2*c_z [double-buffered out] + 128 [lane-padded one-hot]
    #            + 2*c_z [rel + sum temporaries])
    for t in (256, 128, 64, 32, 16, 8):
        if t <= L and L % t == 0 and t * t * 4 * (4 * c_z + 128) <= budget_bytes:
            return t
    return L


def _pick_msa_tile(L, s_cm, budget_bytes=8 << 20):
    for t in (512, 256, 128, 64, 32, 16, 8):
        if t <= L and L % t == 0 and t * 4 * (2 * s_cm + 128) <= budget_bytes:
            return t
    return L


# ---------------------------------------------------------------------------
# pallas_call wrappers
# ---------------------------------------------------------------------------
def pair_representation_pallas(seqs, w1, b1, w2, b2, rel_table, *, c_z):
    """seqs: (B, L, 21); w1/w2: (21, c_z); b1/b2: (1, c_z); rel_table: (65, c_z).
    Returns prw_reps: (B, L, L, c_z)."""
    B, L, f_in = seqs.shape
    t = _pick_pair_tile(L, c_z)
    ti = tj = t
    kern = functools.partial(_prw_kernel, ti=ti, tj=tj, c_z=c_z)

    grid_spec = pltpu.PrefetchScalarGridSpec(
        num_scalar_prefetch=0,
        grid=(B, L // ti, L // tj),
        in_specs=[
            pl.BlockSpec((1, ti, f_in), lambda b, i, j: (b, i, 0)),   # seqs rows i (l2)
            pl.BlockSpec((1, tj, f_in), lambda b, i, j: (b, j, 0)),   # seqs rows j (l1)
            pl.BlockSpec((f_in, c_z), lambda b, i, j: (0, 0)),        # w1
            pl.BlockSpec((1, c_z), lambda b, i, j: (0, 0)),           # b1
            pl.BlockSpec((f_in, c_z), lambda b, i, j: (0, 0)),        # w2
            pl.BlockSpec((1, c_z), lambda b, i, j: (0, 0)),           # b2
            pl.BlockSpec((65, c_z), lambda b, i, j: (0, 0)),          # relpos table
        ],
        out_specs=pl.BlockSpec((1, ti, tj, c_z), lambda b, i, j: (b, i, j, 0)),
    )

    return pl.pallas_call(
        kern,
        out_shape=jax.ShapeDtypeStruct((B, L, L, c_z), seqs.dtype),
        grid_spec=grid_spec,
        compiler_params=pltpu.CompilerParams(
            dimension_semantics=("parallel", "parallel", "parallel"),
            vmem_limit_bytes=48 * 1024 * 1024),
    )(seqs, seqs, w1, b1, w2, b2, rel_table)


def msa_projection_pallas(evos, w_pssm, b_pssm):
    """evos: (B, L, 21); w_pssm: (21, s*c_m); b_pssm: (1, s*c_m).
    Returns msa_flat: (B, L, s*c_m)."""
    B, L, f_in = evos.shape
    s_cm = w_pssm.shape[1]
    t = _pick_msa_tile(L, s_cm)

    grid_spec = pltpu.PrefetchScalarGridSpec(
        num_scalar_prefetch=0,
        grid=(B, L // t),
        in_specs=[
            pl.BlockSpec((1, t, f_in), lambda b, l: (b, l, 0)),
            pl.BlockSpec((f_in, s_cm), lambda b, l: (0, 0)),
            pl.BlockSpec((1, s_cm), lambda b, l: (0, 0)),
        ],
        out_specs=pl.BlockSpec((1, t, s_cm), lambda b, l: (b, l, 0)),
    )

    return pl.pallas_call(
        _msa_kernel,
        out_shape=jax.ShapeDtypeStruct((B, L, s_cm), evos.dtype),
        grid_spec=grid_spec,
        compiler_params=pltpu.CompilerParams(
            dimension_semantics=("parallel", "parallel"),
            vmem_limit_bytes=32 * 1024 * 1024),
    )(evos, w_pssm, b_pssm)


# ---------------------------------------------------------------------------
# Forward (param fusion + layout plumbing)
# ---------------------------------------------------------------------------
def representation_projector_forward(seqs, evos, params, *, s, c_m, c_z):
    B, L, _ = seqs.shape

    # PyTorch Linear weights are (out, in) -> transpose to (in, out).
    w1 = params["l1_w"].T                                   # (21, c_z)
    b1 = params["l1_b"][None, :]                            # (1, c_z)
    w2 = params["l2_w"].T                                   # (21, c_z)
    b2 = params["l2_b"][None, :]                            # (1, c_z)

    # Fuse the s PSSM layers (s, c_m, 21) into one (21, s*c_m) weight.
    w_pssm = jnp.transpose(params["pssm_w"], (2, 0, 1)).reshape(21, s * c_m)
    b_pssm = params["pssm_b"].reshape(1, s * c_m)

    # Relpos table with the bias folded into every row (one-hot rows sum to 1,
    # so  onehot @ (W.T + b) == onehot @ W.T + b  exactly).
    rel_table = params["res_w"].T + params["res_b"][None, :]    # (65, c_z)

    prw = pair_representation_pallas(seqs, w1, b1, w2, b2, rel_table, c_z=c_z)
    msa_flat = msa_projection_pallas(evos, w_pssm, b_pssm)

    # (B, L, s*c_m) -> (B, s, L, c_m): layout plumbing only.
    msa = jnp.transpose(msa_flat.reshape(B, L, s, c_m), (0, 2, 1, 3))
    return prw, msa


# ---------------------------------------------------------------------------
# Pure-JAX reference (mirrors the PyTorch forward exactly)
# ---------------------------------------------------------------------------
def representation_projector_reference(seqs, evos, params, *, s, c_m, c_z):
    B, L, _ = seqs.shape

    msa = (jnp.einsum("blf,kcf->bklc", evos, params["pssm_w"])
           + params["pssm_b"][None, :, None, :])                  # (B,s,L,c_m)

    li = seqs @ params["l1_w"].T + params["l1_b"]                 # (B, L, c_z)
    lj = seqs @ params["l2_w"].T + params["l2_b"]                 # (B, L, c_z)
    outer = li[:, None, :, :] + lj[:, :, None, :]                 # (B,L,L,c_z)

    idx = jnp.arange(L)
    d = jnp.clip(idx[None, :] - idx[:, None], -32, 32) + 32
    relpos = (jax.nn.one_hot(d, 65, dtype=jnp.float32) @ params["res_w"].T
              + params["res_b"])                                  # (L, L, c_z)

    prw = outer + relpos[None]
    return prw, msa


if __name__ == "__main__":
    # Small shapes consistent with the module: 21 input features, 65 relpos
    # classes; batch=2, seq=16, s=4 MSA layers, c_m=32, c_z=16.
    B, L, S, C_M, C_Z = 2, 16, 4, 32, 16

    key = jax.random.PRNGKey(0)
    ks = jax.random.split(key, 10)

    res_ids = jax.random.randint(ks[0], (B, L), 0, 21)
    seqs = jax.nn.one_hot(res_ids, 21, dtype=jnp.float32)             # (B, L, 21)
    evos = jax.random.normal(ks[1], (B, L, 21), dtype=jnp.float32)    # (B, L, 21)

    params = {
        "l1_w": 0.1 * jax.random.normal(ks[2], (C_Z, 21), jnp.float32),
        "l1_b": 0.1 * jax.random.normal(ks[3], (C_Z,), jnp.float32),
        "l2_w": 0.1 * jax.random.normal(ks[4], (C_Z, 21), jnp.float32),
        "l2_b": 0.1 * jax.random.normal(ks[5], (C_Z,), jnp.float32),
        "pssm_w": 0.1 * jax.random.normal(ks[6], (S, C_M, 21), jnp.float32),
        "pssm_b": 0.1 * jax.random.normal(ks[7], (S, C_M), jnp.float32),
        "res_w": 0.1 * jax.random.normal(ks[8], (C_Z, 65), jnp.float32),
        "res_b": 0.1 * jax.random.normal(ks[9], (C_Z,), jnp.float32),
    }

    prw, msa = representation_projector_forward(
        seqs, evos, params, s=S, c_m=C_M, c_z=C_Z)
    prw = jax.block_until_ready(prw)
    msa = jax.block_until_ready(msa)

    prw_ref, msa_ref = representation_projector_reference(
        seqs, evos, params, s=S, c_m=C_M, c_z=C_Z)

    assert prw.shape == (B, L, L, C_Z)
    assert msa.shape == (B, S, L, C_M)
    assert jnp.allclose(prw, prw_ref, atol=1e-4, rtol=1e-4), (
        float(jnp.max(jnp.abs(prw - prw_ref))))
    assert jnp.allclose(msa, msa_ref, atol=1e-4, rtol=1e-4), (
        float(jnp.max(jnp.abs(msa - msa_ref))))

    print("KERNEL_OK")
</pallas_src>

<mosaic_0001>
module attributes {stable_mosaic.version = 11 : i64} {
  func.func @_prw_kernel(%arg0: i32, %arg1: i32, %arg2: i32, %arg3: memref<1x16x21xf32, #tpu.memory_space<vmem>>, %arg4: memref<1x16x21xf32, #tpu.memory_space<vmem>>, %arg5: memref<21x16xf32, #tpu.memory_space<vmem>>, %arg6: memref<1x16xf32, #tpu.memory_space<vmem>>, %arg7: memref<21x16xf32, #tpu.memory_space<vmem>>, %arg8: memref<1x16xf32, #tpu.memory_space<vmem>>, %arg9: memref<65x16xf32, #tpu.memory_space<vmem>>, %arg10: memref<1x16x16x16xf32, #tpu.memory_space<vmem>>) attributes {dimension_semantics = [#tpu.dimension_semantics<parallel>, #tpu.dimension_semantics<parallel>, #tpu.dimension_semantics<parallel>], iteration_bounds = array<i64: 2, 1, 1>, scalar_prefetch = 0 : i64, scratch_operands = 0 : i64, tpu.core_type = #tpu.core_type<tc>, window_params = [{transform_indices = @transform_0, window_bounds = array<i64: 1, 16, 21>}, {transform_indices = @transform_1, window_bounds = array<i64: 1, 16, 21>}, {pipeline_mode = #tpu.pipeline_mode<synchronous>, transform_indices = @transform_2, window_bounds = array<i64: 21, 16>}, {pipeline_mode = #tpu.pipeline_mode<synchronous>, transform_indices = @transform_3, window_bounds = array<i64: 1, 16>}, {pipeline_mode = #tpu.pipeline_mode<synchronous>, transform_indices = @transform_4, window_bounds = array<i64: 21, 16>}, {pipeline_mode = #tpu.pipeline_mode<synchronous>, transform_indices = @transform_5, window_bounds = array<i64: 1, 16>}, {pipeline_mode = #tpu.pipeline_mode<synchronous>, transform_indices = @transform_6, window_bounds = array<i64: 65, 16>}, {transform_indices = @transform_7, window_bounds = array<i64: 1, 16, 16, 16>}]} {
    %c16_i32 = arith.constant 16 : i32
    %0 = arith.muli %arg1, %c16_i32 : i32
    %c16_i32_0 = arith.constant 16 : i32
    %1 = arith.muli %arg2, %c16_i32_0 : i32
    %c0 = arith.constant 0 : index
    %c0_1 = arith.constant 0 : index
    %c0_2 = arith.constant 0 : index
    %2 = vector.load %arg3[%c0, %c0_1, %c0_2] : memref<1x16x21xf32, #tpu.memory_space<vmem>>, vector<1x16x21xf32>
    %3 = vector.shape_cast %2 : vector<1x16x21xf32> to vector<16x21xf32>
    %c0_3 = arith.constant 0 : index
    %c0_4 = arith.constant 0 : index
    %4 = vector.load %arg7[%c0_3, %c0_4] : memref<21x16xf32, #tpu.memory_space<vmem>>, vector<21x16xf32>
    %cst = arith.constant dense<0.000000e+00> : vector<16x16xf32>
    %5 = tpu.matmul %3, %4, %cst {dimension_numbers = #tpu.dot_dimension_numbers<[1], [0], [0], [1], [0, 0, 1, 1], [], []>} : vector<16x21xf32>, vector<21x16xf32>, vector<16x16xf32> -> vector<16x16xf32>
    %c0_5 = arith.constant 0 : index
    %c0_6 = arith.constant 0 : index
    %6 = vector.load %arg8[%c0_5, %c0_6] : memref<1x16xf32, #tpu.memory_space<vmem>>, vector<1x16xf32>
    %7 = vector.broadcast %6 : vector<1x16xf32> to vector<16x16xf32>
    %8 = arith.addf %5, %7 : vector<16x16xf32>
    %c0_7 = arith.constant 0 : index
    %c0_8 = arith.constant 0 : index
    %c0_9 = arith.constant 0 : index
    %9 = vector.load %arg4[%c0_7, %c0_8, %c0_9] : memref<1x16x21xf32, #tpu.memory_space<vmem>>, vector<1x16x21xf32>
    %10 = vector.shape_cast %9 : vector<1x16x21xf32> to vector<16x21xf32>
    %c0_10 = arith.constant 0 : index
    %c0_11 = arith.constant 0 : index
    %11 = vector.load %arg5[%c0_10, %c0_11] : memref<21x16xf32, #tpu.memory_space<vmem>>, vector<21x16xf32>
    %cst_12 = arith.constant dense<0.000000e+00> : vector<16x16xf32>
    %12 = tpu.matmul %10, %11, %cst_12 {dimension_numbers = #tpu.dot_dimension_numbers<[1], [0], [0], [1], [0, 0, 1, 1], [], []>} : vector<16x21xf32>, vector<21x16xf32>, vector<16x16xf32> -> vector<16x16xf32>
    %c0_13 = arith.constant 0 : index
    %c0_14 = arith.constant 0 : index
    %13 = vector.load %arg6[%c0_13, %c0_14] : memref<1x16xf32, #tpu.memory_space<vmem>>, vector<1x16xf32>
    %14 = vector.broadcast %13 : vector<1x16xf32> to vector<16x16xf32>
    %15 = arith.addf %12, %14 : vector<16x16xf32>
    %16 = tpu.iota {dimensions = array<i32: 0>} : vector<16x16xi32>
    %17 = vector.broadcast %0 : i32 to vector<16x16xi32>
    %18 = arith.addi %16, %17 : vector<16x16xi32>
    %19 = tpu.iota {dimensions = array<i32: 1>} : vector<16x16xi32>
    %20 = vector.broadcast %1 : i32 to vector<16x16xi32>
    %21 = arith.addi %19, %20 : vector<16x16xi32>
    %22 = arith.subi %21, %18 : vector<16x16xi32>
    %c-32_i32 = arith.constant -32 : i32
    %c32_i32 = arith.constant 32 : i32
    %23 = vector.broadcast %c-32_i32 : i32 to vector<16x16xi32>
    %24 = arith.maxsi %23, %22 : vector<16x16xi32>
    %25 = vector.broadcast %c32_i32 : i32 to vector<16x16xi32>
    %26 = arith.minsi %25, %24 : vector<16x16xi32>
    %c32_i32_15 = arith.constant 32 : i32
    %27 = vector.broadcast %c32_i32_15 : i32 to vector<16x16xi32>
    %28 = arith.addi %26, %27 : vector<16x16xi32>
    %29 = tpu.iota {dimensions = array<i32: 2>} : vector<16x16x65xi32>
    %30 = vector.shape_cast %28 : vector<16x16xi32> to vector<16x16x1xi32>
    %31 = vector.broadcast %30 : vector<16x16x1xi32> to vector<16x16x65xi32>
    %32 = arith.cmpi eq, %31, %29 : vector<16x16x65xi32>
    %33 = arith.extui %32 : vector<16x16x65xi1> to vector<16x16x65xi32>
    %34 = arith.sitofp %33 : vector<16x16x65xi32> to vector<16x16x65xf32>
    %35 = vector.shape_cast %34 : vector<16x16x65xf32> to vector<256x65xf32>
    %c0_16 = arith.constant 0 : index
    %c0_17 = arith.constant 0 : index
    %36 = vector.load %arg9[%c0_16, %c0_17] : memref<65x16xf32, #tpu.memory_space<vmem>>, vector<65x16xf32>
    %cst_18 = arith.constant dense<0.000000e+00> : vector<256x16xf32>
    %37 = tpu.matmul %35, %36, %cst_18 {dimension_numbers = #tpu.dot_dimension_numbers<[1], [0], [0], [1], [0, 0, 1, 1], [], []>} : vector<256x65xf32>, vector<65x16xf32>, vector<256x16xf32> -> vector<256x16xf32>
    %38 = vector.shape_cast %37 : vector<256x16xf32> to vector<16x16x16xf32>
    %39 = vector.shape_cast %8 : vector<16x16xf32> to vector<16x1x16xf32>
    %40 = vector.shape_cast %15 : vector<16x16xf32> to vector<1x16x16xf32>
    %41 = vector.broadcast %39 : vector<16x1x16xf32> to vector<16x16x16xf32>
    %42 = vector.broadcast %40 : vector<1x16x16xf32> to vector<16x16x16xf32>
    %43 = arith.addf %41, %42 : vector<16x16x16xf32>
    %44 = arith.addf %43, %38 : vector<16x16x16xf32>
    %c0_19 = arith.constant 0 : index
    %c0_20 = arith.constant 0 : index
    %c0_21 = arith.constant 0 : index
    %c0_22 = arith.constant 0 : index
    %45 = vector.load %arg10[%c0_19, %c0_20, %c0_21, %c0_22] : memref<1x16x16x16xf32, #tpu.memory_space<vmem>>, vector<1x16x16x16xf32>
    %46 = vector.shape_cast %45 : vector<1x16x16x16xf32> to vector<16x16x16xf32>
    %47 = vector.shape_cast %44 : vector<16x16x16xf32> to vector<1x16x16x16xf32>
    tpu.vector_store %arg10[%c0_19, %c0_20, %c0_21, %c0_22], %47 {strides = array<i32>} : memref<1x16x16x16xf32, #tpu.memory_space<vmem>>, vector<1x16x16x16xf32>,
    return
  }
  func.func @transform_0(%arg0: i32, %arg1: i32, %arg2: i32) -> (i32, i32, i32) {
    %c0_i32 = arith.constant 0 : i32
    %c0_i32_0 = arith.constant 0 : i32
    return %arg0, %arg1, %c0_i32 : i32, i32, i32
  }
  func.func @transform_1(%arg0: i32, %arg1: i32, %arg2: i32) -> (i32, i32, i32) {
    %c0_i32 = arith.constant 0 : i32
    %c0_i32_0 = arith.constant 0 : i32
    return %arg0, %arg2, %c0_i32 : i32, i32, i32
  }
  func.func @transform_2(%arg0: i32, %arg1: i32, %arg2: i32) -> (i32, i32) {
    %c0_i32 = arith.constant 0 : i32
    %c0_i32_0 = arith.constant 0 : i32
    %c0_i32_1 = arith.constant 0 : i32
    return %c0_i32, %c0_i32_0 : i32, i32
  }
  func.func @transform_3(%arg0: i32, %arg1: i32, %arg2: i32) -> (i32, i32) {
    %c0_i32 = arith.constant 0 : i32
    %c0_i32_0 = arith.constant 0 : i32
    %c0_i32_1 = arith.constant 0 : i32
    return %c0_i32, %c0_i32_0 : i32, i32
  }
  func.func @transform_4(%arg0: i32, %arg1: i32, %arg2: i32) -> (i32, i32) {
    %c0_i32 = arith.constant 0 : i32
    %c0_i32_0 = arith.constant 0 : i32
    %c0_i32_1 = arith.constant 0 : i32
    return %c0_i32, %c0_i32_0 : i32, i32
  }
  func.func @transform_5(%arg0: i32, %arg1: i32, %arg2: i32) -> (i32, i32) {
    %c0_i32 = arith.constant 0 : i32
    %c0_i32_0 = arith.constant 0 : i32
    %c0_i32_1 = arith.constant 0 : i32
    return %c0_i32, %c0_i32_0 : i32, i32
  }
  func.func @transform_6(%arg0: i32, %arg1: i32, %arg2: i32) -> (i32, i32) {
    %c0_i32 = arith.constant 0 : i32
    %c0_i32_0 = arith.constant 0 : i32
    %c0_i32_1 = arith.constant 0 : i32
    return %c0_i32, %c0_i32_0 : i32, i32
  }
  func.func @transform_7(%arg0: i32, %arg1: i32, %arg2: i32) -> (i32, i32, i32, i32) {
    %c0_i32 = arith.constant 0 : i32
    %c0_i32_0 = arith.constant 0 : i32
    return %arg0, %arg1, %arg2, %c0_i32 : i32, i32, i32, i32
  }
}

</mosaic_0001>

<bundles_post_ra>
// kernel: tpu_custom_call.1
= control target key start
LH: loop header
LB: loop body
LE: loop exit
PB: predicated region body
PF: predicated region fallthrough
CT: control target
= control target key end

     0   :  { %12 = vsyncpa [#allocation3], 0  ;;  %s2546_s0 = inlined_call_operand.vmem [shape: f32[2,16,21], index: 0, kind: input, shape index: {}]   ;;  %s2547_s1 = inlined_call_operand.vmem [shape: f32[2,16,21], index: 1, kind: input, shape index: {}]   ;;  %s2548_s2 = inlined_call_operand.vmem [shape: f32[21,16], index: 2, kind: input, shape index: {}]   ;;  %s2549_s3 = inlined_call_operand.vmem [shape: f32[1,16], index: 3, kind: input, shape index: {}]   ;;  %s2550_s4 = inlined_call_operand.vmem [shape: f32[21,16], index: 4, kind: input, shape index: {}]   ;;  %s2551_s5 = inlined_call_operand.vmem [shape: f32[1,16], index: 5, kind: input, shape index: {}]   ;;  %s2552_s6 = inlined_call_operand.vmem [shape: f32[65,16], index: 6, kind: input, shape index: {}]   ;;  %s2553_s7 = inlined_call_operand.hbm [shape: f32[2,16,16,16], index: 7, kind: output, shape index: {}]  }
   0x1   :  { %14 = vsyncpa [#allocation3 + $0x1], 0  ;;  %s2021_s24 = smov 0   ;;  %s2023_s25 = smov 0  }
   0x2   :  { %s2025_s26 = smov 0   ;;  %s2027_s27 = smov 0  }
   0x3   :  { %s2029_s28 = smov 0   ;;  %s2031_s29 = smov 0  }
   0x4 LB: > { %s1577_s30 = sadd.s32 4294967295, %s1974_s29   ;;  %s1578_s8 = sadd.s32 4294967294, %s1974_s29   ;;  %s1974_s29 = sphi %s2031_s29, %s20_s29   ;;  %s1970_s28 = sphi %s2029_s28, %s2560_s28   ;;  %s1966_s27 = sphi %s2027_s27, %s2559_s27   ;;  %s1962_s26 = sphi %s2025_s26, %s2558_s26   ;;  %s1958_s25 = sphi %s2023_s25, %s2557_s25   ;;  %s1954_s24 = sphi %s2021_s24, %s2556_s24  }
   0x5   : > { %s39_s9 = sadd.s32 1, %s1970_s28  ;;  %s211_s10 = sadd.s32 1, %s1962_s26 }
   0x6   : > { %p41_p0 = scmp.ge.s32.totalorder %s39_s9, 2  ;;  %p221_p1 = scmp.ne.s32.totalorder %s1962_s26, %s1958_s25 }
   0x7   : > { %p222_p2 = scmp.eq.s32.totalorder %s1577_s30, 1  ;;  %p227_p3 = scmp.ne.s32.totalorder %s1958_s25, %s1954_s24 }
   0x8   : > { %s2562_s9 = smov (%p41_p0, %s39_s9), 0  ;;  %p228_p5 = scmp.eq.s32.totalorder %s1578_s8, 1 }
   0x9   : > { %p2061_p4 = por %p222_p2, %p221_p1  ;;  %s204_s12 = ssub.s32 %s1970_s28, %s2562_s9 }
   0xa   : > { %p1581_p6 = scmp.ge.s32.totalorder %s1974_s29, 1  ;;  %p209_p7 = scmp.eq.s32.totalorder %s204_s12, 0 }
   0xb   : > { %p2068_p8 = por %p228_p5, %p227_p3  ;;  %p287_p9 = scmp.lt.s32.totalorder %s1974_s29, 3 }
   0xc   : > { %s2074_s14 = scalar_select %p209_p7, %s1962_s26, %s211_s10  }
   0xd   : > { %p288_p10 = pnand %p1581_p6, %p287_p9 }
   0xe   : > { %v550_v0 = vlaneseq (!%p288_p10)  ;;  %v358_v1 = vld [vmem:[%s2550_s4] sm:$0xff] (!%p288_p10)  ;;  %v359_v2 = vld [vmem:[%s2550_s4 + $0x8] sm:$0xff] (!%p288_p10)  ;;  %p333_p11 = scmp.lt.s32.totalorder (!%p288_p10), %s1966_s27, 1  ;;  %v360_v4 = vld [vmem:[%s2550_s4 + $0x10] sm:$0x1f] (!%p288_p10)  ;;  %vm375_vm0 = vcmask (!%p288_p10), 1044480  }
   0xf   : > { %291 = sbr.rel (%p288_p10) target bundleno = 434 (0x1b2), region = 48  ;;  %v1803_v3 = vpack.c.bf16 (!%p288_p10), %v359_v2, %v358_v1  ;;  %v844_v5 = vld [vmem:[%s2552_s6] sm:$0xff] (!%p288_p10)  ;;  %v845_v8 = vld [vmem:[%s2552_s6 + $0x8] sm:$0xff] (!%p288_p10)  ;;  %vm368_vm1 = vcmask (!%p288_p10), 171008   ;;  %v846_v14 = vld [vmem:[%s2552_s6 + $0x10] sm:$0xff] (!%p288_p10)  ;;  %vm950_vm4 = vcmask (!%p288_p10), 1040384  }
  0x10   : > { %v2089_v6 = vshrl.u32 (!%p288_p10), %v550_v0, 7  ;;  %v2091_v7 = vand.u32 (!%p288_p10), 127, %v550_v0  ;;  %v456_v9 = vld [vmem:[%s2548_s2] sm:$0xff] (!%p288_p10)  ;;  %v457_v10 = vld [vmem:[%s2548_s2 + $0x8] sm:$0xff] (!%p288_p10)  ;;  %v847_v15 = vld [vmem:[%s2552_s6 + $0x18] sm:$0xff] (!%p288_p10)  ;;  %v1811_v17 = vpack.c.bf16 (!%p288_p10), %v845_v8, %v844_v5  ;;  %vm853_vm5 = vcmask (!%p288_p10), 531456  }
  0x11   : > { %1804 = vmatprep.subr.bf16.mxu0 (!%p288_p10), %v1803_v3  ;;  %v1807_v11 = vpack.c.bf16 (!%p288_p10), %v457_v10, %v456_v9  ;;  %v458_v16 = vld [vmem:[%s2548_s2 + $0x10] sm:$0x1f] (!%p288_p10)  ;;  %v1815_v24 = vpack.c.bf16 (!%p288_p10), %v847_v15, %v846_v14  ;;  %v848_v27 = vld [vmem:[%s2552_s6 + $0x20] sm:$0xff] (!%p288_p10)  ;;  %v849_v28 = vld [vmem:[%s2552_s6 + $0x28] sm:$0xff] (!%p288_p10)  ;;  %v1976_v61 = vmov (!%p288_p10), 0.0   ;;  %s329_s18 = sand.u32 (!%p288_p10), 1, %s1958_s25  }
  0x12   : > { %v560_v12 = vsub.s32 (!%p288_p10), %v2091_v7, %v2089_v6  ;;  %v552_v13 = vadd.s32 (!%p288_p10), 8, %v2089_v6  ;;  %1806 = vmatpush3.bf16.msra.mxu0 (!%p288_p10), %v1803_v3  ;;  %v2123_v18 = vsub.s32 (!%p288_p10), 0, %v2089_v6  ;;  %v585_v26 = vsub.s32 (!%p288_p10), 1, %v2089_v6  ;;  %v850_v36 = vld [vmem:[%s2552_s6 + $0x30] sm:$0xff] (!%p288_p10)  ;;  %v851_v37 = vld [vmem:[%s2552_s6 + $0x38] sm:$0xff] (!%p288_p10)  ;;  %s1582_s19 = sshll.u32 (!%p288_p10), %s329_s18, 8 }
  0x13   : > { %1723 = vmatprep.subr.msk.mxu0 (!%p288_p10), %vm375_vm0, %v360_v4  ;;  %1808 = vmatprep.subr.bf16.mxu1 (!%p288_p10), %v1807_v11  ;;  %v1819_v32 = vpack.c.bf16 (!%p288_p10), %v849_v28, %v848_v27  ;;  %v1823_v38 = vpack.c.bf16 (!%p288_p10), %v851_v37, %v850_v36  ;;  %v596_v40 = vsub.s32 (!%p288_p10), 2, %v2089_v6  ;;  %v852_v41 = vld [vmem:[%s2552_s6 + $0x40] sm:$0x1] (!%p288_p10)  ;;  %v607_v44 = vsub.s32 (!%p288_p10), 3, %v2089_v6  ;;  %s2395_s20 = scalar_lea.vmem (!%p288_p10), [#allocation2], %s1582_s19  ;;  %s1667_s21 = sshll.u32 (!%p288_p10), %s1966_s27, 12 }
  0x14   : > { %vm566_vm2 = vcmp.lt.s32.totalorder (!%p288_p10), %v560_v12, 32  ;;  %v561_v19 = vsub.s32 (!%p288_p10), %v2091_v7, %v552_v13  ;;  %1810 = vmatpush3.bf16.msra.mxu1 (!%p288_p10), %v1807_v11  ;;  %v618_v47 = vsub.s32 (!%p288_p10), 4, %v2089_v6  ;;  %v629_v50 = vsub.s32 (!%p288_p10), 5, %v2089_v6  ;;  %s1475_s22 = sshll.u32 (!%p288_p10), %s2395_s20, 4  ;;  %s2484_s10 = scalar_lea.hbm (!%p288_p10), %s2553_s7, %s1667_s21  ;;  %s2486_s22 = int_to_ptr.vmem [resolvable:$true] %s1475_s22 }
  0x15   : > { %v567_v23 = vsel (!%p288_p10), %vm566_vm2, %v560_v12, 32  ;;  %1732 = vmatprep.subr.msk.mxu1 (!%p288_p10), %vm375_vm0, %v458_v16  ;;  %v640_v53 = vsub.s32 (!%p288_p10), 6, %v2089_v6  ;;  %v651_v56 = vsub.s32 (!%p288_p10), 7, %v2089_v6 }
  0x16   : > { %s334_s23 = scalar_select %p333_p11, %s1966_s27, 1  ;;  %v2128_v25 = vadd.s32 32, %v567_v23  ;;  %vm568_vm3 = vcmp.lt.s32.totalorder %v561_v19, 32  ;;  %1724 = vmatpush3.msk.msra.mxu0 %vm375_vm0, %v360_v4 }
  0x17   : > { %v569_v29 = vsel %vm568_vm3, %v561_v19, 32  ;;  %1812 = vmatprep.subr.bf16.mxu0 %v1811_v17  ;;  %s2500_s27 = scalar_lea.sflag [#allocation3], %s329_s18 }
  0x18   : > { %s1665_s17 = sshll.u32 %s334_s23, 4  ;;  %v575_v30 = vrot.slane %v2128_v25, %v2123_v18  ;;  %v2142_v31 = vadd.s32 32, %v569_v29  ;;  %1733 = vmatpush3.msk.msra.mxu1 %vm375_vm0, %v458_v16  ;;  %v586_v34 = vrot.slane %v2128_v25, %v585_v26  ;;  %v597_v43 = vrot.slane %v2128_v25, %v596_v40  ;;  %s1978_s23 = smov [#allocation2]  }
  0x19   : > { %s340_s12 = scalar_lea.vmem %s2546_s0, %s1665_s17  ;;  %s350_s16 = scalar_lea.vmem %s2547_s1, %s1665_s17  ;;  %1827 = vmatprep.subr.bf16.mxu1 %v1811_v17  ;;  %v608_v46 = vrot.slane %v2128_v25, %v607_v44  ;;  %v619_v49 = vrot.slane %v2128_v25, %v618_v47  ;;  %v630_v52 = vrot.slane %v2128_v25, %v629_v50  ;;  %v641_v55 = vrot.slane %v2128_v25, %v640_v53 }
  0x1a   : > { %v356_v20 = vld [vmem:[%s340_s12] sm:$0xff]  ;;  %v357_v21 = vld [vmem:[%s340_s12 + $0x8] sm:$0xff]  ;;  %581 = vbcast.lane.b32.xlu1 %v575_v30, 264  ;;  %577 = vbcast.lane.b32.xlu0 %v575_v30, 256  ;;  %v663_v35 = vrot.slane %v2142_v31, %v2123_v18  ;;  %v674_v39 = vrot.slane %v2142_v31, %v585_v26  ;;  %v685_v42 = vrot.slane %v2142_v31, %v596_v40  ;;  %s1896_s12 = scalar_lea.vmem %s2486_s22, 4096  ;;  %s1900_s15 = sshll.u32 %s1978_s23, 4  ;;  %s1901_s15 = int_to_ptr.vmem [resolvable:$false] %s1900_s15 }
  0x1b   : > { %v454_v22 = vld [vmem:[%s350_s16] sm:$0xff]  ;;  %1725 = vmatprep.mubr.msk.f32.mxu0 %vm368_vm1, %v356_v20  ;;  %v455_v33 = vld [vmem:[%s350_s16 + $0x8] sm:$0xff]  ;;  %v696_v45 = vrot.slane %v2142_v31, %v607_v44  ;;  %v707_v48 = vrot.slane %v2142_v31, %v618_v47  ;;  %v718_v51 = vrot.slane %v2142_v31, %v629_v50  ;;  %v729_v54 = vrot.slane %v2142_v31, %v640_v53  ;;  %p1897_p12 = scmp.ne.s32.totalorder %s2486_s22, %s1896_s12  ;;  %s1902_s16 = scalar_lea.vmem %s1901_s15, 8192 }
  0x1c   : > { %1734 = vmatprep.mubr.msk.f32.mxu1 %vm368_vm1, %v454_v22  ;;  %1726 = vmatmul.mubr.msk.f32.vlgmr.msra.gmra.mrb[0].mxu0 %vm368_vm1, %v357_v21  ;;  %v740_v57 = vrot.slane %v2142_v31, %v651_v56  ;;  %v652_v58 = vrot.slane %v2128_v25, %v651_v56  ;;  %p1903_p1 = scmp.lt.s32.totalorder %s2486_s22, %s1901_s15  ;;  %p1904_p2 = scmp.lt.s32.totalorder %s1902_s16, %s1896_s12 }
  0x1d   : > { %1814 = vmatpush3.bf16.msra.mxu0 %v1811_v17  ;;  %1735 = vmatmul.mubr.msk.f32.vlgmr.msra.gmra.mrb[0].mxu1 %vm368_vm1, %v455_v33  ;;  %p1898_p13 = pnand %p1897_p12, %p2061_p4 }
  0x1e   : > { %1816 = vmatprep.subr.bf16.mxu0 %v1815_v24  ;;  %1832 = vmatpush3.bf16.msra.mxu1 %v1811_v17  ;;  %p1905_p3 = por %p1904_p2, %p1903_p1 }
  0x1f   : > { %588 = vbcast.lane.b32.xlu0 %v586_v34, 256  ;;  %669 = vbcast.lane.b32.xlu1 %v663_v35, 264  ;;  %p1899_p0 = pneg %p1898_p13 }
  0x20   : > { %1828 = vmatprep.subr.bf16.mxu1 %v1815_v24 }
  0x21   : > { %1818 = vmatpush3.bf16.msra.mxu0 %v1815_v24  ;;  %p1906_p5 = pnand %p1905_p3, %p1899_p0 }
  0x22   : > { %1820 = vmatprep.subr.bf16.mxu0 %v1819_v32  ;;  %1833 = vmatpush3.bf16.msra.mxu1 %v1815_v24 }
  0x23   : > { %592 = vbcast.lane.b32.xlu0 %v586_v34, 264  ;;  %676 = vbcast.lane.b32.xlu1 %v674_v39, 256 }
  0x24   : > { %1829 = vmatprep.subr.bf16.mxu1 %v1819_v32 }
  0x25   : > { %1822 = vmatpush3.bf16.msra.mxu0 %v1819_v32 }
  0x26   : > { %1824 = vmatprep.subr.bf16.mxu0 %v1823_v38  ;;  %1834 = vmatpush3.bf16.msra.mxu1 %v1819_v32 }
  0x27   : > { %680 = vbcast.lane.b32.xlu1 %v674_v39, 264  ;;  %665 = vbcast.lane.b32.xlu0 %v663_v35, 256 }
  0x28   : > { %1830 = vmatprep.subr.bf16.mxu1 %v1823_v38 }
  0x29   : > { %1826 = vmatpush3.bf16.msra.mxu0 %v1823_v38 }
  0x2a   : > { %1753 = vmatprep.subr.msk.mxu0 %vm950_vm4, %v852_v41  ;;  %1835 = vmatpush3.bf16.msra.mxu1 %v1823_v38 }
  0x2b   : > { %687 = vbcast.lane.b32.xlu1 %v685_v42, 256  ;;  %599 = vbcast.lane.b32.xlu0 %v597_v43, 256 }
  0x2c   : > { %1831 = vmatprep.subr.msk.mxu1 %vm950_vm4, %v852_v41 }
  0x2d   : > { %1754 = vmatpush3.msk.msra.mxu0 %vm950_vm4, %v852_v41 }
  0x2e   : > { %1836 = vmatpush3.msk.msra.mxu1 %vm950_vm4, %v852_v41 }
  0x2f   : > { %691 = vbcast.lane.b32.xlu1 %v685_v42, 264  ;;  %603 = vbcast.lane.b32.xlu0 %v597_v43, 264 }
  0x33   : > { %698 = vbcast.lane.b32.xlu1 %v696_v45, 256  ;;  %610 = vbcast.lane.b32.xlu0 %v608_v46, 256 }
  0x37   : > { %702 = vbcast.lane.b32.xlu1 %v696_v45, 264  ;;  %614 = vbcast.lane.b32.xlu0 %v608_v46, 264 }
  0x3b   : > { %709 = vbcast.lane.b32.xlu1 %v707_v48, 256  ;;  %621 = vbcast.lane.b32.xlu0 %v619_v49, 256 }
  0x3f   : > { %713 = vbcast.lane.b32.xlu1 %v707_v48, 264  ;;  %625 = vbcast.lane.b32.xlu0 %v619_v49, 264 }
  0x43   : > { %720 = vbcast.lane.b32.xlu1 %v718_v51, 256  ;;  %632 = vbcast.lane.b32.xlu0 %v630_v52, 256 }
  0x47   : > { %724 = vbcast.lane.b32.xlu1 %v718_v51, 264  ;;  %636 = vbcast.lane.b32.xlu0 %v630_v52, 264 }
  0x4b   : > { %731 = vbcast.lane.b32.xlu1 %v729_v54, 256  ;;  %643 = vbcast.lane.b32.xlu0 %v641_v55, 256 }
  0x4f   : > { %735 = vbcast.lane.b32.xlu1 %v729_v54, 264  ;;  %647 = vbcast.lane.b32.xlu0 %v641_v55, 264 }
  0x53   : > { %742 = vbcast.lane.b32.xlu1 %v740_v57, 256  ;;  %654 = vbcast.lane.b32.xlu0 %v652_v58, 256 }
  0x57   : > { %746 = vbcast.lane.b32.xlu1 %v740_v57, 264  ;;  %658 = vbcast.lane.b32.xlu0 %v652_v58, 264 }
  0x8c   : > { %v582_v59 = vpop.permute.xlu1 %581  ;;  %v578_v60 = vpop.permute.xlu0 %577 }
  0x8d   : > { %vm749_vm6 = vcmp.eq.s32.totalorder %v582_v59, %v2091_v7  ;;  %vm748_vm7 = vcmp.eq.s32.totalorder %v578_v60, %v2091_v7 }
  0x8e   : > { %v1596_v62 = vsel %vm749_vm6, 1.0, %v1976_v61  ;;  %v1595_v63 = vsel %vm748_vm7, 1.0, %v1976_v61 }
  0x8f   : > { %1755 = vmatprep.mubr.msk.f32.mxu0 %vm853_vm5, %v1595_v63 }
  0x90   : > { %1756 = vmatmul.mubr.msk.f32.vlgmr.msra.gmra.mrb[2].mxu0 %vm853_vm5, %v1596_v62 }
  0x91   : > { %v589_v0 = vpop.permute.xlu0 %588  ;;  %v670_v1 = vpop.permute.xlu1 %669 }
  0x92   : > { %vm750_vm8 = vcmp.eq.s32.totalorder %v589_v0, %v2091_v7  ;;  %vm765_vm10 = vcmp.eq.s32.totalorder %v670_v1, %v2091_v7  ;;  %v1977_v0 = vmov 1966171168  }
  0x93   : > { %v1597_v2 = vsel %vm750_vm8, 1.0, %v1976_v61  ;;  %v1612_v11 = vsel %vm765_vm10, 1.0, %v1976_v61  ;;  %v1183_v1 = vunpack.c.l.s4 %v1977_v0 }
  0x94   : > { %1758 = vmatprep.mubr.msk.f32.mxu0 %vm853_vm5, %v1597_v2 }
  0x95   : > { %v593_v3 = vpop.permute.xlu0 %592  ;;  %v677_v4 = vpop.permute.xlu1 %676  ;;  %v1184_v2 = vunpack.c.0.s8 %v1183_v1 }
  0x96   : > { %vm751_vm9 = vcmp.eq.s32.totalorder %v593_v3, %v2091_v7  ;;  %vm766_vm11 = vcmp.eq.s32.totalorder %v677_v4, %v2091_v7  ;;  %v1587_v3 = vld [vmem:[%s2551_s5] ss:$0 sm:$0xff] }
  0x97   : > { %v1598_v5 = vsel %vm751_vm9, 1.0, %v1976_v61  ;;  %v1613_v12 = vsel %vm766_vm11, 1.0, %v1976_v61 }
  0x98   : > { %1759 = vmatmul.mubr.msk.f32.gmra.mrb[4].mxu0 %vm853_vm5, %v1598_v5  ;;  %v1187_v5 = vsub.s32 %v1184_v2, %v2089_v6 }
  0x99   : > { %v681_v8 = vpop.permute.xlu1 %680  ;;  %v666_v9 = vpop.permute.xlu0 %665 }
  0x9a   : > { %vm764_vm12 = vcmp.eq.s32.totalorder %v666_v9, %v2091_v7  ;;  %vm767_vm13 = vcmp.eq.s32.totalorder %v681_v8, %v2091_v7 }
  0x9b   : > { %v1611_v10 = vsel %vm764_vm12, 1.0, %v1976_v61  ;;  %v1614_v16 = vsel %vm767_vm13, 1.0, %v1976_v61 }
  0x9c   : > { %1779 = vmatprep.mubr.msk.f32.mxu1 %vm853_vm5, %v1611_v10 }
  0x9d   : > { %v688_v13 = vpop.permute.xlu1 %687  ;;  %v600_v14 = vpop.permute.xlu0 %599  ;;  %1780 = vmatmul.mubr.msk.f32.vlgmr.msra.gmra.mrb[2].mxu1 %vm853_vm5, %v1612_v11 }
  0x9e   : > { %vm768_vm14 = vcmp.eq.s32.totalorder %v688_v13, %v2091_v7  ;;  %vm752_vm15 = vcmp.eq.s32.totalorder %v600_v14, %v2091_v7  ;;  %1782 = vmatprep.mubr.msk.f32.mxu1 %vm853_vm5, %v1613_v12 }
  0x9f   : > { %v1599_v15 = vsel %vm752_vm15, 1.0, %v1976_v61  ;;  %v1615_v17 = vsel %vm768_vm14, 1.0, %v1976_v61 }
  0xa0   : > { %1761 = vmatprep.mubr.msk.f32.mxu0 %vm853_vm5, %v1599_v15 }
  0xa1   : > { %v692_v19 = vpop.permute.xlu1 %691  ;;  %v604_v20 = vpop.permute.xlu0 %603  ;;  %1783 = vmatmul.mubr.msk.f32.gmra.mrb[4].mxu1 %vm853_vm5, %v1614_v16 }
  0xa2   : > { %vm769_vm0 = vcmp.eq.s32.totalorder %v692_v19, %v2091_v7  ;;  %vm753_vm1 = vcmp.eq.s32.totalorder %v604_v20, %v2091_v7  ;;  %1785 = vmatprep.mubr.msk.f32.mxu1 %vm853_vm5, %v1615_v17 }
  0xa3   : > { %v1616_v21 = vsel %vm769_vm0, 1.0, %v1976_v61  ;;  %v1600_v22 = vsel %vm753_vm1, 1.0, %v1976_v61 }
  0xa4   : > { %1762 = vmatmul.mubr.msk.f32.gmra.mrb[6].mxu0 %vm853_vm5, %v1600_v22 }
  0xa5   : > { %v699_v23 = vpop.permute.xlu1 %698  ;;  %v611_v24 = vpop.permute.xlu0 %610  ;;  %1786 = vmatmul.mubr.msk.f32.gmra.mrb[6].mxu1 %vm853_vm5, %v1616_v21 }
  0xa6   : > { %vm770_vm2 = vcmp.eq.s32.totalorder %v699_v23, %v2091_v7  ;;  %vm754_vm3 = vcmp.eq.s32.totalorder %v611_v24, %v2091_v7 }
  0xa7   : > { %v1617_v25 = vsel %vm770_vm2, 1.0, %v1976_v61  ;;  %v1601_v26 = vsel %vm754_vm3, 1.0, %v1976_v61 }
  0xa8   : > { %1764 = vmatprep.mubr.msk.f32.mxu0 %vm853_vm5, %v1601_v26  ;;  %1788 = vmatprep.mubr.msk.f32.mxu1 %vm853_vm5, %v1617_v25 }
  0xa9   : > { %v703_v27 = vpop.permute.xlu1 %702  ;;  %v615_v28 = vpop.permute.xlu0 %614 }
  0xaa   : > { %vm771_vm4 = vcmp.eq.s32.totalorder %v703_v27, %v2091_v7  ;;  %vm755_vm6 = vcmp.eq.s32.totalorder %v615_v28, %v2091_v7 }
  0xab   : > { %v1618_v29 = vsel %vm771_vm4, 1.0, %v1976_v61  ;;  %v1602_v30 = vsel %vm755_vm6, 1.0, %v1976_v61 }
  0xac   : > { %1765 = vmatmul.mubr.msk.f32.gmra.mrb[8].mxu0 %vm853_vm5, %v1602_v30  ;;  %1789 = vmatmul.mubr.msk.f32.gmra.mrb[8].mxu1 %vm853_vm5, %v1618_v29 }
  0xad   : > { %v710_v31 = vpop.permute.xlu1 %709  ;;  %v622_v32 = vpop.permute.xlu0 %621 }
  0xae   : > { %vm772_vm7 = vcmp.eq.s32.totalorder %v710_v31, %v2091_v7  ;;  %vm756_vm8 = vcmp.eq.s32.totalorder %v622_v32, %v2091_v7 }
  0xaf   : > { %v1619_v33 = vsel %vm772_vm7, 1.0, %v1976_v61  ;;  %v1603_v34 = vsel %vm756_vm8, 1.0, %v1976_v61 }
  0xb0   : > { %1767 = vmatprep.mubr.msk.f32.mxu0 %vm853_vm5, %v1603_v34  ;;  %1791 = vmatprep.mubr.msk.f32.mxu1 %vm853_vm5, %v1619_v33 }
  0xb1   : > { %v714_v35 = vpop.permute.xlu1 %713  ;;  %v626_v36 = vpop.permute.xlu0 %625 }
  0xb2   : > { %vm773_vm9 = vcmp.eq.s32.totalorder %v714_v35, %v2091_v7  ;;  %vm757_vm10 = vcmp.eq.s32.totalorder %v626_v36, %v2091_v7 }
  0xb3   : > { %v1620_v37 = vsel %vm773_vm9, 1.0, %v1976_v61  ;;  %v1604_v38 = vsel %vm757_vm10, 1.0, %v1976_v61 }
  0xb4   : > { %1768 = vmatmul.mubr.msk.f32.gmra.mrb[10].mxu0 %vm853_vm5, %v1604_v38  ;;  %1792 = vmatmul.mubr.msk.f32.gmra.mrb[10].mxu1 %vm853_vm5, %v1620_v37 }
  0xb5   : > { %v721_v39 = vpop.permute.xlu1 %720  ;;  %v633_v40 = vpop.permute.xlu0 %632 }
  0xb6   : > { %vm774_vm11 = vcmp.eq.s32.totalorder %v721_v39, %v2091_v7  ;;  %vm758_vm12 = vcmp.eq.s32.totalorder %v633_v40, %v2091_v7 }
  0xb7   : > { %v1621_v41 = vsel %vm774_vm11, 1.0, %v1976_v61  ;;  %v1605_v42 = vsel %vm758_vm12, 1.0, %v1976_v61 }
  0xb8   : > { %1770 = vmatprep.mubr.msk.f32.mxu0 %vm853_vm5, %v1605_v42  ;;  %1794 = vmatprep.mubr.msk.f32.mxu1 %vm853_vm5, %v1621_v41 }
  0xb9   : > { %v725_v43 = vpop.permute.xlu1 %724  ;;  %v637_v44 = vpop.permute.xlu0 %636 }
  0xba   : > { %vm775_vm13 = vcmp.eq.s32.totalorder %v725_v43, %v2091_v7  ;;  %vm759_vm14 = vcmp.eq.s32.totalorder %v637_v44, %v2091_v7 }
  0xbb   : > { %v1622_v45 = vsel %vm775_vm13, 1.0, %v1976_v61  ;;  %v1606_v46 = vsel %vm759_vm14, 1.0, %v1976_v61 }
  0xbc   : > { %1771 = vmatmul.mubr.msk.f32.gmra.mrb[12].mxu0 %vm853_vm5, %v1606_v46  ;;  %1795 = vmatmul.mubr.msk.f32.gmra.mrb[12].mxu1 %vm853_vm5, %v1622_v45 }
  0xbd   : > { %v732_v47 = vpop.permute.xlu1 %731  ;;  %v644_v48 = vpop.permute.xlu0 %643 }
  0xbe   : > { %vm776_vm15 = vcmp.eq.s32.totalorder %v732_v47, %v2091_v7  ;;  %vm760_vm0 = vcmp.eq.s32.totalorder %v644_v48, %v2091_v7 }
  0xbf   : > { %v1623_v49 = vsel %vm776_vm15, 1.0, %v1976_v61  ;;  %v1607_v50 = vsel %vm760_vm0, 1.0, %v1976_v61 }
  0xc0   : > { %1773 = vmatprep.mubr.msk.f32.mxu0 %vm853_vm5, %v1607_v50  ;;  %1797 = vmatprep.mubr.msk.f32.mxu1 %vm853_vm5, %v1623_v49 }
  0xc1   : > { %v736_v51 = vpop.permute.xlu1 %735  ;;  %v648_v52 = vpop.permute.xlu0 %647 }
  0xc2   : > { %vm777_vm1 = vcmp.eq.s32.totalorder %v736_v51, %v2091_v7  ;;  %vm761_vm2 = vcmp.eq.s32.totalorder %v648_v52, %v2091_v7 }
  0xc3   : > { %v1624_v53 = vsel %vm777_vm1, 1.0, %v1976_v61  ;;  %v1608_v54 = vsel %vm761_vm2, 1.0, %v1976_v61 }
  0xc4   : > { %1774 = vmatmul.mubr.msk.f32.gmra.mrb[14].mxu0 %vm853_vm5, %v1608_v54  ;;  %1798 = vmatmul.mubr.msk.f32.gmra.mrb[14].mxu1 %vm853_vm5, %v1624_v53 }
  0xc5   : > { %v743_v55 = vpop.permute.xlu1 %742  ;;  %v655_v56 = vpop.permute.xlu0 %654 }
  0xc6   : > { %vm778_vm3 = vcmp.eq.s32.totalorder %v743_v55, %v2091_v7  ;;  %vm762_vm4 = vcmp.eq.s32.totalorder %v655_v56, %v2091_v7 }
  0xc7   : > { %v1625_v57 = vsel %vm778_vm3, 1.0, %v1976_v61  ;;  %v1609_v58 = vsel %vm762_vm4, 1.0, %v1976_v61 }
  0xc8   : > { %1776 = vmatprep.mubr.msk.f32.mxu0 %vm853_vm5, %v1609_v58  ;;  %1800 = vmatprep.mubr.msk.f32.mxu1 %vm853_vm5, %v1625_v57 }
  0xc9   : > { %v747_v59 = vpop.permute.xlu1 %746  ;;  %v659_v60 = vpop.permute.xlu0 %658 }
  0xca   : > { %vm779_vm6 = vcmp.eq.s32.totalorder %v747_v59, %v2091_v7  ;;  %vm763_vm7 = vcmp.eq.s32.totalorder %v659_v60, %v2091_v7 }
  0xcb   : > { %v1626_v62 = vsel %vm779_vm6, 1.0, %v1976_v61  ;;  %v1610_v63 = vsel %vm763_vm7, 1.0, %v1976_v61  ;;  %v1591_v61 = vld [vmem:[%s2549_s3] ss:$0 sm:$0xff] }
  0xcc   : > { %1777 = vmatmul.mubr.msk.f32.gmra.mrb[16].mxu0 %vm853_vm5, %v1610_v63  ;;  %1801 = vmatmul.mubr.msk.f32.gmra.mrb[16].mxu1 %vm853_vm5, %v1626_v62  ;;  %vm1423_vm5 = vcmask 130048  }
  0xef   : > { %v1727_v4 = vpop.f32.mrb[0].mxu0 }
  0xf0   : > { %v451_v8 = vadd.f32 %v1727_v4, %v1587_v3  ;;  %v445_v7 = vpop.f32.mrb[1].mxu0  ;;  %v1736_v17 = vpop.f32.mrb[0].mxu1 }
  0xf1   : > { %v446_v9 = vadd.f32 %v1587_v3, %v445_v7  ;;  %v2284_v22 = vadd.f32 %v1736_v17, %v1591_v61  ;;  %v541_v6 = vpop.f32.mrb[1].mxu1 }
  0xf2   : > { %v1230_v10 = vcombine.high %v451_v8, %v451_v8  ;;  %v1237_v11 = vrot.slane %v451_v8, %v1187_v5  ;;  %v2286_v24 = vadd.f32 %v1591_v61, %v541_v6 }
  0xf3   : > { %v1181_v12 = vcombine.high %v446_v9, %v446_v9  ;;  %v1188_v13 = vrot.slane %v446_v9, %v1187_v5 }
  0xf4   : > { %v1244_v14 = vrot.slane %v1230_v10, %v1187_v5  ;;  %v1245_v15 = vcombine.high %v1237_v11, %v1237_v11  ;;  %v1253_v16 = vrot.slane %v1237_v11, %v1187_v5 }
  0xf5   : > { %v1195_v19 = vrot.slane %v1181_v12, %v1187_v5  ;;  %v1196_v20 = vcombine.high %v1188_v13, %v1188_v13  ;;  %v1204_v21 = vrot.slane %v1188_v13, %v1187_v5 }
  0xf6   : > { %v1246_v23 = vcombine.high %v1244_v14, %v1244_v14  ;;  %v1314_v25 = vrot.slane %v1253_v16, %v2123_v18  ;;  %v1267_v26 = vrot.slane %v1245_v15, %v1187_v5  ;;  %v1275_v34 = vcombine.high %v1253_v16, %v1253_v16 }
  0xf7   : > { %v1197_v27 = vcombine.high %v1195_v19, %v1195_v19  ;;  %v1282_v28 = vrot.slane %v1204_v21, %v2123_v18  ;;  %v1218_v29 = vrot.slane %v1196_v20, %v1187_v5  ;;  %v1226_v30 = vcombine.high %v1204_v21, %v1204_v21 }
  0xf8   : > { %v2291_v31 = vadd.f32 %v1314_v25, %v2284_v22  ;;  %v2294_v32 = vadd.f32 %v1314_v25, %v2286_v24  ;;  %v1318_v33 = vrot.slane %v1267_v26, %v2123_v18  ;;  %v1322_v41 = vrot.slane %v1275_v34, %v2123_v18 }
  0xf9   : > { %v1360_v35 = vadd.f32 %v1282_v28, %v2284_v22  ;;  %v1359_v36 = vadd.f32 %v1282_v28, %v2286_v24  ;;  %v1286_v37 = vrot.slane %v1218_v29, %v2123_v18  ;;  %v1290_v38 = vrot.slane %v1226_v30, %v2123_v18 }
  0xfa   : > { %v2302_v39 = vadd.f32 %v1318_v33, %v2284_v22  ;;  %v2305_v40 = vadd.f32 %v1318_v33, %v2286_v24  ;;  %v1228_v42 = vcombine.high %v1218_v29, %v1218_v29  ;;  %v2317_v47 = vadd.f32 %v1322_v41, %v2284_v22 }
  0xfb   : > { %v1362_v43 = vadd.f32 %v1286_v37, %v2284_v22  ;;  %v1361_v44 = vadd.f32 %v1286_v37, %v2286_v24  ;;  %v2311_v45 = vadd.f32 %v1290_v38, %v2284_v22  ;;  %v2314_v46 = vadd.f32 %v1290_v38, %v2286_v24 }
  0xfc   : > { %v2320_v48 = vadd.f32 %v1322_v41, %v2286_v24  ;;  %v1294_v49 = vrot.slane %v1228_v42, %v2123_v18  ;;  %v1277_v50 = vcombine.high %v1267_v26, %v1267_v26  ;;  %v1211_v51 = vrot.slane %v1195_v19, %v1187_v5 }
  0xfd   : > { %v1260_v52 = vrot.slane %v1244_v14, %v1187_v5  ;;  %v1225_v53 = vrot.slane %v1197_v27, %v1187_v5  ;;  %v1274_v54 = vrot.slane %v1246_v23, %v1187_v5 }
  0xfe   : > { %v2324_v55 = vadd.f32 %v1294_v49, %v2284_v22  ;;  %v1326_v56 = vrot.slane %v1277_v50, %v2123_v18  ;;  %v2328_v57 = vadd.f32 %v1294_v49, %v2286_v24  ;;  %v1298_v58 = vrot.slane %v1211_v51, %v2123_v18 }
  0xff   : > { %v1330_v59 = vrot.slane %v1260_v52, %v2123_v18  ;;  %v1302_v60 = vrot.slane %v1225_v53, %v2123_v18  ;;  %v1334_v62 = vrot.slane %v1274_v54, %v2123_v18  ;;  %v1227_v1 = vcombine.high %v1211_v51, %v1211_v51 }
 0x100   : > { %v2335_v63 = vadd.f32 %v1326_v56, %v2284_v22  ;;  %v2338_v0 = vadd.f32 %v1326_v56, %v2286_v24  ;;  %v1276_v2 = vcombine.high %v1260_v52, %v1260_v52  ;;  %v2341_v3 = vadd.f32 %v1298_v58, %v2284_v22 }
 0x101   : > { %v2344_v4 = vadd.f32 %v1330_v59, %v2284_v22  ;;  %v2347_v5 = vadd.f32 %v1298_v58, %v2286_v24  ;;  %v2350_v8 = vadd.f32 %v1330_v59, %v2286_v24  ;;  %v2353_v7 = vadd.f32 %v1302_v60, %v2284_v22 }
 0x102   : > { %v2356_v9 = vadd.f32 %v1334_v62, %v2284_v22  ;;  %v2359_v10 = vadd.f32 %v1302_v60, %v2286_v24  ;;  %v2362_v11 = vadd.f32 %v1334_v62, %v2286_v24  ;;  %v1306_v61 = vrot.slane %v1227_v1, %v2123_v18 }
 0x103   : > { %v1338_v12 = vrot.slane %v1276_v2, %v2123_v18  ;;  %v1229_v13 = vcombine.high %v1225_v53, %v1225_v53  ;;  %v1278_v14 = vcombine.high %v1274_v54, %v1274_v54 }
 0x104   : > { %v2367_v15 = vadd.f32 %v1306_v61, %v2284_v22  ;;  %v2373_v17 = vadd.f32 %v1306_v61, %v2286_v24 }
 0x105   : > { %v2370_v16 = vadd.f32 %v1338_v12, %v2284_v22  ;;  %v2376_v19 = vadd.f32 %v1338_v12, %v2286_v24  ;;  %v1310_v20 = vrot.slane %v1229_v13, %v2123_v18  ;;  %v1342_v21 = vrot.slane %v1278_v14, %v2123_v18 }
 0x107   : > { %v2381_v6 = vadd.f32 %v1310_v20, %v2284_v22  ;;  %v2384_v23 = vadd.f32 %v1342_v21, %v2284_v22  ;;  %v2387_v25 = vadd.f32 %v1310_v20, %v2286_v24  ;;  %v2390_v26 = vadd.f32 %v1342_v21, %v2286_v24 }
 0x163   : > { %v1757_v27 = vpop.f32.mrb[2].mxu0 }
 0x164   : > { %v1392_v28 = vadd.f32 %v1757_v27, %v1360_v35  ;;  %v1020_v29 = vpop.f32.mrb[3].mxu0 }
 0x165   : > { %v1391_v18 = vadd.f32 %v1359_v36, %v1020_v29 }
 0x166   : > { %1425 = vst.msk [vmem:[%s2395_s20 + $0x8] sm:$0xff] %vm1423_vm5, %v1392_v28 }
 0x167   : > { %1424 = vst.msk [vmem:[%s2395_s20] sm:$0xff] %vm1423_vm5, %v1391_v18 }
 0x16b   : > { %v1760_v22 = vpop.f32.mrb[4].mxu0 }
 0x16c   : > { %v1394_v24 = vadd.f32 %v1760_v22, %v1362_v43  ;;  %v1030_v30 = vpop.f32.mrb[5].mxu0 }
 0x16d   : > { %v1393_v33 = vadd.f32 %v1361_v44, %v1030_v30 }
 0x16e   : > { %1427 = vst.msk [vmem:[%s2395_s20 + $0x18] sm:$0xff] %vm1423_vm5, %v1394_v24 }
 0x16f   : > { %1426 = vst.msk [vmem:[%s2395_s20 + $0x10] sm:$0xff] %vm1423_vm5, %v1393_v33 }
 0x170   : > { %v1781_v34 = vpop.f32.mrb[2].mxu1 }
 0x171   : > { %v1408_v35 = vadd.f32 %v1781_v34, %v2291_v31  ;;  %v1100_v36 = vpop.f32.mrb[3].mxu1 }
 0x172   : > { %v1407_v37 = vadd.f32 %v2294_v32, %v1100_v36 }
 0x173   : > { %1441 = vst.msk [vmem:[%s2395_s20 + $0x88] sm:$0xff] %vm1423_vm5, %v1408_v35 }
 0x174   : > { %1440 = vst.msk [vmem:[%s2395_s20 + $0x80] sm:$0xff] %vm1423_vm5, %v1407_v37  ;;  %v1784_v38 = vpop.f32.mrb[4].mxu1 }
 0x175   : > { %v1410_v41 = vadd.f32 %v1784_v38, %v2302_v39  ;;  %v1110_v42 = vpop.f32.mrb[5].mxu1 }
 0x176   : > { %v1409_v43 = vadd.f32 %v2305_v40, %v1110_v42 }
 0x177   : > { %1443 = vst.msk [vmem:[%s2395_s20 + $0x98] sm:$0xff] %vm1423_vm5, %v1410_v41  ;;  %v1763_v31 = vpop.f32.mrb[6].mxu0 }
 0x178   : > { %1442 = vst.msk [vmem:[%s2395_s20 + $0x90] sm:$0xff] %vm1423_vm5, %v1409_v43  ;;  %v1396_v32 = vadd.f32 %v1763_v31, %v2311_v45  ;;  %v1040_v44 = vpop.f32.mrb[7].mxu0  ;;  %v1787_v49 = vpop.f32.mrb[6].mxu1 }
 0x179   : > { %v1395_v50 = vadd.f32 %v2314_v46, %v1040_v44  ;;  %v1412_v51 = vadd.f32 %v1787_v49, %v2317_v47  ;;  %v1120_v39 = vpop.f32.mrb[7].mxu1 }
 0x17a   : > { %1429 = vst.msk [vmem:[%s2395_s20 + $0x28] sm:$0xff] %vm1423_vm5, %v1396_v32  ;;  %v1411_v40 = vadd.f32 %v2320_v48, %v1120_v39 }
 0x17b   : > { %1428 = vst.msk [vmem:[%s2395_s20 + $0x20] sm:$0xff] %vm1423_vm5, %v1395_v50  ;;  %1445 = vst.msk [vmem:[%s2395_s20 + $0xa8] sm:$0xff] %vm1423_vm5, %v1412_v51 }
 0x17c   : > { %1444 = vst.msk [vmem:[%s2395_s20 + $0xa0] sm:$0xff] %vm1423_vm5, %v1411_v40 }
 0x17f   : > { %v1766_v45 = vpop.f32.mrb[8].mxu0  ;;  %v1790_v52 = vpop.f32.mrb[8].mxu1 }
 0x180   : > { %v1398_v46 = vadd.f32 %v1766_v45, %v2324_v55  ;;  %v1414_v47 = vadd.f32 %v1790_v52, %v2335_v63  ;;  %v1050_v53 = vpop.f32.mrb[9].mxu0  ;;  %v1130_v54 = vpop.f32.mrb[9].mxu1 }
 0x181   : > { %v1397_v56 = vadd.f32 %v2328_v57, %v1050_v53  ;;  %v1413_v48 = vadd.f32 %v2338_v0, %v1130_v54 }
 0x182   : > { %1431 = vst.msk [vmem:[%s2395_s20 + $0x38] sm:$0xff] %vm1423_vm5, %v1398_v46  ;;  %1447 = vst.msk [vmem:[%s2395_s20 + $0xb8] sm:$0xff] %vm1423_vm5, %v1414_v47 }
 0x183   : > { %1430 = vst.msk [vmem:[%s2395_s20 + $0x30] sm:$0xff] %vm1423_vm5, %v1397_v56  ;;  %1446 = vst.msk [vmem:[%s2395_s20 + $0xb0] sm:$0xff] %vm1423_vm5, %v1413_v48 }
 0x187   : > { %v1769_v55 = vpop.f32.mrb[10].mxu0  ;;  %v1793_v58 = vpop.f32.mrb[10].mxu1 }
 0x188   : > { %v1400_v59 = vadd.f32 %v1769_v55, %v2341_v3  ;;  %v1416_v60 = vadd.f32 %v1793_v58, %v2344_v4  ;;  %v1060_v62 = vpop.f32.mrb[11].mxu0  ;;  %v1140_v57 = vpop.f32.mrb[11].mxu1 }
 0x189   : > { %v1399_v63 = vadd.f32 %v2347_v5, %v1060_v62  ;;  %v1415_v0 = vadd.f32 %v2350_v8, %v1140_v57 }
 0x18a   : > { %1433 = vst.msk [vmem:[%s2395_s20 + $0x48] sm:$0xff] %vm1423_vm5, %v1400_v59  ;;  %1449 = vst.msk [vmem:[%s2395_s20 + $0xc8] sm:$0xff] %vm1423_vm5, %v1416_v60 }
 0x18b   : > { %1432 = vst.msk [vmem:[%s2395_s20 + $0x40] sm:$0xff] %vm1423_vm5, %v1399_v63  ;;  %1448 = vst.msk [vmem:[%s2395_s20 + $0xc0] sm:$0xff] %vm1423_vm5, %v1415_v0 }
 0x18f   : > { %v1772_v1 = vpop.f32.mrb[12].mxu0  ;;  %v1796_v2 = vpop.f32.mrb[12].mxu1 }
 0x190   : > { %v1402_v3 = vadd.f32 %v1772_v1, %v2353_v7  ;;  %v1418_v4 = vadd.f32 %v1796_v2, %v2356_v9  ;;  %v1070_v61 = vpop.f32.mrb[13].mxu0  ;;  %v1150_v5 = vpop.f32.mrb[13].mxu1 }
 0x191   : > { %v1401_v8 = vadd.f32 %v2359_v10, %v1070_v61  ;;  %v1417_v12 = vadd.f32 %v2362_v11, %v1150_v5 }
 0x192   : > { %1435 = vst.msk [vmem:[%s2395_s20 + $0x58] sm:$0xff] %vm1423_vm5, %v1402_v3  ;;  %1451 = vst.msk [vmem:[%s2395_s20 + $0xd8] sm:$0xff] %vm1423_vm5, %v1418_v4 }
 0x193   : > { %1434 = vst.msk [vmem:[%s2395_s20 + $0x50] sm:$0xff] %vm1423_vm5, %v1401_v8  ;;  %1450 = vst.msk [vmem:[%s2395_s20 + $0xd0] sm:$0xff] %vm1423_vm5, %v1417_v12 }
 0x197   : > { %v1775_v7 = vpop.f32.mrb[14].mxu0  ;;  %v1799_v9 = vpop.f32.mrb[14].mxu1 }
 0x198   : > { %v1404_v13 = vadd.f32 %v1775_v7, %v2367_v15  ;;  %v1420_v10 = vadd.f32 %v1799_v9, %v2370_v16  ;;  %v1080_v14 = vpop.f32.mrb[15].mxu0  ;;  %v1160_v20 = vpop.f32.mrb[15].mxu1 }
 0x199   : > { %v1403_v11 = vadd.f32 %v2373_v17, %v1080_v14  ;;  %v1419_v21 = vadd.f32 %v2376_v19, %v1160_v20 }
 0x19a   : > { %1437 = vst.msk [vmem:[%s2395_s20 + $0x68] sm:$0xff] %vm1423_vm5, %v1404_v13  ;;  %1453 = vst.msk [vmem:[%s2395_s20 + $0xe8] sm:$0xff] %vm1423_vm5, %v1420_v10 }
 0x19b   : > { %1436 = vst.msk [vmem:[%s2395_s20 + $0x60] sm:$0xff] %vm1423_vm5, %v1403_v11  ;;  %1452 = vst.msk [vmem:[%s2395_s20 + $0xe0] sm:$0xff] %vm1423_vm5, %v1419_v21 }
 0x19f   : > { %v1778_v15 = vpop.f32.mrb[16].mxu0  ;;  %v1802_v16 = vpop.f32.mrb[16].mxu1 }
 0x1a0   : > { %v1406_v17 = vadd.f32 %v1778_v15, %v2381_v6  ;;  %v1422_v19 = vadd.f32 %v1802_v16, %v2384_v23  ;;  %v1090_v27 = vpop.f32.mrb[17].mxu0  ;;  %v1170_v28 = vpop.f32.mrb[17].mxu1 }
 0x1a1   : > { %v1405_v29 = vadd.f32 %v2387_v25, %v1090_v27  ;;  %v1421_v18 = vadd.f32 %v2390_v26, %v1170_v28 }
 0x1a2   : > { %1439 = vst.msk [vmem:[%s2395_s20 + $0x78] sm:$0xff] %vm1423_vm5, %v1406_v17  ;;  %1455 = vst.msk [vmem:[%s2395_s20 + $0xf8] sm:$0xff] %vm1423_vm5, %v1422_v19 }
 0x1a3   : > { %1438 = vst.msk [vmem:[%s2395_s20 + $0x70] sm:$0xff] %vm1423_vm5, %v1405_v29  ;;  %1454 = vst.msk [vmem:[%s2395_s20 + $0xf0] sm:$0xff] %vm1423_vm5, %v1421_v18 }
 0x1a4   : > { %1909 = shalt.err (!%p1906_p5)
}
 0x1a5   : > { %s1910_s17 = scalar_lea.hbm %s2484_s10, 4096  ;;  %s1914_s20 = scalar_lea.hbm %s2553_s7, 8192 }
 0x1a6   : > { %p1911_p6 = scmp.ne.s32.totalorder %s2484_s10, %s1910_s17  ;;  %p1915_p10 = scmp.lt.u32.totalorder %s2484_s10, %s2553_s7 }
 0x1a7   : > { %p1916_p11 = scmp.lt.u32.totalorder %s1914_s20, %s1910_s17  ;;  %p1918_p13 = scmp.lt.u32.totalorder %s1910_s17, %s2484_s10 }
 0x1a8   : > { %p1912_p7 = pnand %p1911_p6, %p2061_p4 }
 0x1a9   : > { %p1917_p12 = por %p1916_p11, %p1915_p10 }
 0x1aa   : > { %p1913_p9 = pneg %p1912_p7 }
 0x1ab   : > { %p1919_p0 = por %p1918_p13, %p1917_p12 }
 0x1ad   : > { %p1920_p1 = pnand %p1919_p0, %p1913_p9 }
 0x1af   : > { %1923 = shalt.err (!%p1920_p1)
}
 0x1b0   : > { %s1979_s8 = smov 128   ;;  %s1980_s12 = smov 8  }
 0x1b1   : > { %1837 = dma.vmem_to_hbm [thread:$0]  (%p2061_p4), %s2486_s22, 4096, %s2484_s10, %s2500_s27, %s1979_s8, %s1979_s8, %s1980_s12  }
 0x1b2 PF: > { %p1843_p2 = scmp.ge.s32.totalorder %s1974_s29, 2  ;;  %s1490_s23 = sand.u32 1, %s1954_s24  }
 0x1b3   : > { %s1491_s15 = scalar_lea.sflag [#allocation3], %s1490_s23 }
 0x1b4   : > { %p1840_p3 = pnand %p1843_p2, %p2068_p8 }
 0x1b6   : > { %1949 = dma.done.wait (!%p1840_p3), %s1491_s15, 4096  }
 0x1b7   : > { %1951 = vsyncadd (!%p1840_p3), %s1491_s15, 4294963200  ;;  %s20_s29 = sadd.s32 1, %s1974_s29   ;;  %s2556_s24 = smov %s1958_s25 }
 0x1b8   : > { %p17_p5 = scmp.ge.s32.totalorder %s20_s29, 4   ;;  %s2557_s25 = smov %s1962_s26 }
 0x1b9   : > { %s2558_s26 = smov %s2074_s14  ;;  %s2559_s27 = smov %s1970_s28 }
 0x1ba   : > { %s2560_s28 = smov %s2562_s9  ;;  %19 = sbr.rel (!%p17_p5) target bundleno = 4 (0x4), region = 86 }
 0x1c1   :  { %1496 = vsyncpa [#allocation3], 1 }
 0x1c2   :  { %1498 = vsyncpa [#allocation3 + $0x1], 1 }

</bundles_post_ra>
